<compile_context>
chip_gen: v7x
topology: tpu7x:2x2x1
jax: 0.10.0
libtpu: 0.0.40
codegen_flags: <defaults>
</compile_context>

<pallas_src>
import functools

import jax
import jax.numpy as jnp
from jax import lax
from jax.experimental import pallas as pl
from jax.experimental.pallas import tpu as pltpu


def _round_up(x, m):
    return ((x + m - 1) // m) * m


def _fused_kernel(ids_ref, tag_ref, ques_ref, w_ref, b_ref, o_ref, z_ref,
                  *, n_tag, n_ques, tm):
    """ids in SMEM; tag/ques/w/b resident in VMEM; builds z then fc+softmax."""
    base = pl.program_id(0) * tm

    # Build the (tm, D_pad) activation tile row by row via in-kernel gather.
    def build_row(r, carry):
        idx = ids_ref[base + r]                       # scalar int32 from SMEM
        is_q = (idx >= n_tag).astype(jnp.float32)     # 0.0 tag / 1.0 ques
        t_idx = jnp.clip(jnp.where(idx >= n_tag, 0, idx), 0, n_tag - 1)
        q_idx = jnp.clip(jnp.where(idx >= n_tag, idx - n_tag, 0), 0, n_ques - 1)
        t_row = tag_ref[pl.ds(t_idx, 1), :]           # (1, D_pad)
        q_row = ques_ref[pl.ds(q_idx, 1), :]          # (1, D_pad)
        z_ref[pl.ds(r, 1), :] = t_row * (1.0 - is_q) + q_row * is_q
        return carry

    lax.fori_loop(0, tm, build_row, 0, unroll=(tm <= 16))

    # Linear (MXU) + bias.
    logits = jnp.dot(z_ref[...], w_ref[...],
                     preferred_element_type=jnp.float32) + b_ref[...]

    # Mask padded output columns so they do not contribute to the softmax.
    col = lax.broadcasted_iota(jnp.int32, logits.shape, 1)
    logits = jnp.where(col < n_tag, logits, jnp.float32(-1e30))

    # Numerically stable softmax; reciprocal goes to the EUP slot.
    m = jnp.max(logits, axis=-1, keepdims=True)
    e = jnp.exp(logits - m)
    denom = jnp.sum(e, axis=-1, keepdims=True)
    o_ref[...] = (e * pl.reciprocal(denom, approx=False)).astype(o_ref.dtype)


def prepare_params(tag_embs, ques_embs, fc_w, fc_b):
    """One-time parameter prep: pad emb_dim / n_tag to 128 lanes and store the
    fc weight pre-transposed as (D_pad, T_pad).  Zero padding contributes 0 to
    the logits; padded columns are masked inside the kernel."""
    n_tag, D = tag_embs.shape
    n_ques = ques_embs.shape[0]
    T = fc_w.shape[0]
    D_pad = _round_up(D, 128)
    T_pad = _round_up(T, 128)

    tag_p = jnp.zeros((n_tag, D_pad), jnp.float32).at[:, :D].set(tag_embs)
    ques_p = jnp.zeros((n_ques, D_pad), jnp.float32).at[:, :D].set(ques_embs)
    w_p = jnp.zeros((D_pad, T_pad), jnp.float32).at[:D, :T].set(fc_w.T)
    b_p = jnp.zeros((1, T_pad), jnp.float32).at[0, :T].set(fc_b)
    return tag_p, ques_p, w_p, b_p


def skip_gram_split_2_forward(item_ids, tag_p, ques_p, w_p, b_p, n_tag,
                              *, block_rows=256):
    """Forward pass.  Params must come from prepare_params().

    item_ids : (N,) int32
    returns  : (N, n_tag) float32 softmax probabilities, rows ordered as in the
               torch module: tag items first, then question items.
    """
    N = item_ids.shape[0]
    n_tag_rows, D_pad = tag_p.shape
    n_ques_rows = ques_p.shape[0]
    T_pad = w_p.shape[1]

    # torch split/concat ordering: tags first (original order), then questions.
    ques_mask = item_ids >= n_tag
    order = jnp.argsort(ques_mask.astype(jnp.int32), stable=True)
    ids = item_ids[order].astype(jnp.int32)

    # Batch tile: multiple of 8 sublanes, capped at block_rows.
    tm = min(block_rows, _round_up(N, 8))
    N_pad = _round_up(N, tm)
    ids_pad = jnp.zeros((N_pad,), jnp.int32).at[:N].set(ids)

    kernel = functools.partial(_fused_kernel, n_tag=n_tag,
                               n_ques=n_ques_rows, tm=tm)

    out = pl.pallas_call(
        kernel,
        out_shape=jax.ShapeDtypeStruct((N_pad, T_pad), jnp.float32),
        grid_spec=pltpu.PrefetchScalarGridSpec(
            num_scalar_prefetch=1,           # ids -> SMEM, visible to index_maps
            grid=(N_pad // tm,),
            in_specs=[
                pl.BlockSpec((n_tag_rows, D_pad), lambda i, ids_sm: (0, 0)),
                pl.BlockSpec((n_ques_rows, D_pad), lambda i, ids_sm: (0, 0)),
                pl.BlockSpec((D_pad, T_pad), lambda i, ids_sm: (0, 0)),
                pl.BlockSpec((1, T_pad), lambda i, ids_sm: (0, 0)),
            ],
            out_specs=pl.BlockSpec((tm, T_pad), lambda i, ids_sm: (i, 0)),
            scratch_shapes=[pltpu.VMEM((tm, D_pad), jnp.float32)],
        ),
        compiler_params=pltpu.CompilerParams(
            dimension_semantics=("parallel",)),
    )(ids_pad, tag_p, ques_p, w_p, b_p)

    return out[:N, :n_tag]


def _reference_forward(item_ids, tag_embs, ques_embs, fc_w, fc_b, n_tag):
    """Pure-JAX reference mirroring the torch module (for the sanity check)."""
    ques_mask = item_ids >= n_tag
    order = jnp.argsort(ques_mask.astype(jnp.int32), stable=True)
    ids = item_ids[order]
    is_q = ids >= n_tag
    tag_rows = tag_embs[jnp.clip(ids, 0, tag_embs.shape[0] - 1)]
    ques_rows = ques_embs[jnp.clip(ids - n_tag, 0, ques_embs.shape[0] - 1)]
    z = jnp.where(is_q[:, None], ques_rows, tag_rows)
    logits = z @ fc_w.T + fc_b
    return jax.nn.softmax(logits, axis=-1)


if __name__ == "__main__":
    emb_dim = 30
    n_tag = 16
    n_ques = 16
    N = 8  # number of item ids

    key = jax.random.PRNGKey(0)
    k1, k2, k3, k4, k5 = jax.random.split(key, 5)

    # Deterministic synthetic parameters (mirrors module __init__ shapes).
    tag_embs = jax.random.normal(k1, (n_tag, emb_dim), dtype=jnp.float32)
    ques_embs = jax.random.normal(k2, (n_ques, emb_dim), dtype=jnp.float32)
    fc_w = (jax.random.normal(k3, (n_tag, emb_dim), dtype=jnp.float32)
            * (1.0 / jnp.sqrt(emb_dim)))
    fc_b = jax.random.normal(k4, (n_tag,), dtype=jnp.float32) * 0.01

    # item ids span both the tag range [0, n_tag) and ques range [n_tag, n_tag+n_ques).
    item_ids = jax.random.randint(k5, (N,), 0, n_tag + n_ques, dtype=jnp.int32)

    # One-time parameter prep (padding + weight transpose).
    tag_p, ques_p, w_p, b_p = prepare_params(tag_embs, ques_embs, fc_w, fc_b)

    out = skip_gram_split_2_forward(item_ids, tag_p, ques_p, w_p, b_p, n_tag)
    out = jax.block_until_ready(out)

    # Sanity checks: shape, softmax rows sum to 1, and parity with pure-JAX ref.
    assert out.shape == (N, n_tag)
    row_sums = jnp.sum(out, axis=-1)
    assert bool(jnp.all(jnp.abs(row_sums - 1.0) < 1e-5))
    ref = _reference_forward(item_ids, tag_embs, ques_embs, fc_w, fc_b, n_tag)
    assert bool(jnp.allclose(out, ref, atol=1e-5, rtol=1e-5))

    print("KERNEL_OK")
</pallas_src>

<mosaic_0001>
module attributes {stable_mosaic.version = 11 : i64} {
  func.func @_fused_kernel(%arg0: i32, %arg1: memref<8xi32, #tpu.memory_space<smem>>, %arg2: memref<16x128xf32, #tpu.memory_space<vmem>>, %arg3: memref<16x128xf32, #tpu.memory_space<vmem>>, %arg4: memref<128x128xf32, #tpu.memory_space<vmem>>, %arg5: memref<1x128xf32, #tpu.memory_space<vmem>>, %arg6: memref<8x128xf32, #tpu.memory_space<vmem>>, %arg7: memref<8x128xf32, #tpu.memory_space<vmem>>) attributes {dimension_semantics = [#tpu.dimension_semantics<parallel>], iteration_bounds = array<i64: 1>, scalar_prefetch = 1 : i64, scratch_operands = 1 : i64, tpu.core_type = #tpu.core_type<tc>, window_params = [{pipeline_mode = #tpu.pipeline_mode<synchronous>, transform_indices = @transform_0, window_bounds = array<i64: 16, 128>}, {pipeline_mode = #tpu.pipeline_mode<synchronous>, transform_indices = @transform_1, window_bounds = array<i64: 16, 128>}, {pipeline_mode = #tpu.pipeline_mode<synchronous>, transform_indices = @transform_2, window_bounds = array<i64: 128, 128>}, {pipeline_mode = #tpu.pipeline_mode<synchronous>, transform_indices = @transform_3, window_bounds = array<i64: 1, 128>}, {transform_indices = @transform_4, window_bounds = array<i64: 8, 128>}]} {
    %c8_i32 = arith.constant 8 : i32
    %0 = arith.muli %arg0, %c8_i32 : i32
    %c0_i32 = arith.constant 0 : i32
    %1 = arith.addi %0, %c0_i32 : i32
    %2 = arith.index_cast %1 : i32 to index
    %3 = memref.load %arg1[%2] : memref<8xi32, #tpu.memory_space<smem>>
    %c16_i32 = arith.constant 16 : i32
    %4 = arith.cmpi sge, %3, %c16_i32 : i32
    %5 = arith.extui %4 : i1 to i32
    %6 = arith.sitofp %5 : i32 to f32
    %c16_i32_0 = arith.constant 16 : i32
    %7 = arith.cmpi sge, %3, %c16_i32_0 : i32
    %c0_i32_1 = arith.constant 0 : i32
    %8 = arith.select %7, %c0_i32_1, %3 : i32
    %c0_i32_2 = arith.constant 0 : i32
    %c15_i32 = arith.constant 15 : i32
    %9 = arith.maxsi %c0_i32_2, %8 : i32
    %10 = arith.minsi %c15_i32, %9 : i32
    %c16_i32_3 = arith.constant 16 : i32
    %11 = arith.cmpi sge, %3, %c16_i32_3 : i32
    %c16_i32_4 = arith.constant 16 : i32
    %12 = arith.subi %3, %c16_i32_4 : i32
    %c0_i32_5 = arith.constant 0 : i32
    %13 = arith.select %11, %12, %c0_i32_5 : i32
    %c0_i32_6 = arith.constant 0 : i32
    %c15_i32_7 = arith.constant 15 : i32
    %14 = arith.maxsi %c0_i32_6, %13 : i32
    %15 = arith.minsi %c15_i32_7, %14 : i32
    %16 = arith.index_cast %10 : i32 to index
    %c0 = arith.constant 0 : index
    %17 = vector.load %arg2[%16, %c0] : memref<16x128xf32, #tpu.memory_space<vmem>>, vector<1x128xf32>
    %18 = arith.index_cast %15 : i32 to index
    %c0_8 = arith.constant 0 : index
    %19 = vector.load %arg3[%18, %c0_8] : memref<16x128xf32, #tpu.memory_space<vmem>>, vector<1x128xf32>
    %cst = arith.constant 1.000000e+00 : f32
    %20 = arith.subf %cst, %6 : f32
    %21 = vector.broadcast %20 : f32 to vector<1x128xf32>
    %22 = arith.mulf %17, %21 : vector<1x128xf32>
    %23 = vector.broadcast %6 : f32 to vector<1x128xf32>
    %24 = arith.mulf %19, %23 : vector<1x128xf32>
    %25 = arith.addf %22, %24 : vector<1x128xf32>
    %26 = arith.index_cast %c0_i32 : i32 to index
    %c0_9 = arith.constant 0 : index
    %27 = vector.load %arg7[%26, %c0_9] : memref<8x128xf32, #tpu.memory_space<vmem>>, vector<1x128xf32>
    tpu.vector_store %arg7[%26, %c0_9], %25 {strides = array<i32>} : memref<8x128xf32, #tpu.memory_space<vmem>>, vector<1x128xf32>,
    %c1_i32 = arith.constant 1 : i32
    %28 = arith.addi %0, %c1_i32 : i32
    %29 = arith.index_cast %28 : i32 to index
    %30 = memref.load %arg1[%29] : memref<8xi32, #tpu.memory_space<smem>>
    %c16_i32_10 = arith.constant 16 : i32
    %31 = arith.cmpi sge, %30, %c16_i32_10 : i32
    %32 = arith.extui %31 : i1 to i32
    %33 = arith.sitofp %32 : i32 to f32
    %c16_i32_11 = arith.constant 16 : i32
    %34 = arith.cmpi sge, %30, %c16_i32_11 : i32
    %c0_i32_12 = arith.constant 0 : i32
    %35 = arith.select %34, %c0_i32_12, %30 : i32
    %c0_i32_13 = arith.constant 0 : i32
    %c15_i32_14 = arith.constant 15 : i32
    %36 = arith.maxsi %c0_i32_13, %35 : i32
    %37 = arith.minsi %c15_i32_14, %36 : i32
    %c16_i32_15 = arith.constant 16 : i32
    %38 = arith.cmpi sge, %30, %c16_i32_15 : i32
    %c16_i32_16 = arith.constant 16 : i32
    %39 = arith.subi %30, %c16_i32_16 : i32
    %c0_i32_17 = arith.constant 0 : i32
    %40 = arith.select %38, %39, %c0_i32_17 : i32
    %c0_i32_18 = arith.constant 0 : i32
    %c15_i32_19 = arith.constant 15 : i32
    %41 = arith.maxsi %c0_i32_18, %40 : i32
    %42 = arith.minsi %c15_i32_19, %41 : i32
    %43 = arith.index_cast %37 : i32 to index
    %c0_20 = arith.constant 0 : index
    %44 = vector.load %arg2[%43, %c0_20] : memref<16x128xf32, #tpu.memory_space<vmem>>, vector<1x128xf32>
    %45 = arith.index_cast %42 : i32 to index
    %c0_21 = arith.constant 0 : index
    %46 = vector.load %arg3[%45, %c0_21] : memref<16x128xf32, #tpu.memory_space<vmem>>, vector<1x128xf32>
    %cst_22 = arith.constant 1.000000e+00 : f32
    %47 = arith.subf %cst_22, %33 : f32
    %48 = vector.broadcast %47 : f32 to vector<1x128xf32>
    %49 = arith.mulf %44, %48 : vector<1x128xf32>
    %50 = vector.broadcast %33 : f32 to vector<1x128xf32>
    %51 = arith.mulf %46, %50 : vector<1x128xf32>
    %52 = arith.addf %49, %51 : vector<1x128xf32>
    %53 = arith.index_cast %c1_i32 : i32 to index
    %c0_23 = arith.constant 0 : index
    %54 = vector.load %arg7[%53, %c0_23] : memref<8x128xf32, #tpu.memory_space<vmem>>, vector<1x128xf32>
    tpu.vector_store %arg7[%53, %c0_23], %52 {strides = array<i32>} : memref<8x128xf32, #tpu.memory_space<vmem>>, vector<1x128xf32>,
    %c2_i32 = arith.constant 2 : i32
    %55 = arith.addi %0, %c2_i32 : i32
    %56 = arith.index_cast %55 : i32 to index
    %57 = memref.load %arg1[%56] : memref<8xi32, #tpu.memory_space<smem>>
    %c16_i32_24 = arith.constant 16 : i32
    %58 = arith.cmpi sge, %57, %c16_i32_24 : i32
    %59 = arith.extui %58 : i1 to i32
    %60 = arith.sitofp %59 : i32 to f32
    %c16_i32_25 = arith.constant 16 : i32
    %61 = arith.cmpi sge, %57, %c16_i32_25 : i32
    %c0_i32_26 = arith.constant 0 : i32
    %62 = arith.select %61, %c0_i32_26, %57 : i32
    %c0_i32_27 = arith.constant 0 : i32
    %c15_i32_28 = arith.constant 15 : i32
    %63 = arith.maxsi %c0_i32_27, %62 : i32
    %64 = arith.minsi %c15_i32_28, %63 : i32
    %c16_i32_29 = arith.constant 16 : i32
    %65 = arith.cmpi sge, %57, %c16_i32_29 : i32
    %c16_i32_30 = arith.constant 16 : i32
    %66 = arith.subi %57, %c16_i32_30 : i32
    %c0_i32_31 = arith.constant 0 : i32
    %67 = arith.select %65, %66, %c0_i32_31 : i32
    %c0_i32_32 = arith.constant 0 : i32
    %c15_i32_33 = arith.constant 15 : i32
    %68 = arith.maxsi %c0_i32_32, %67 : i32
    %69 = arith.minsi %c15_i32_33, %68 : i32
    %70 = arith.index_cast %64 : i32 to index
    %c0_34 = arith.constant 0 : index
    %71 = vector.load %arg2[%70, %c0_34] : memref<16x128xf32, #tpu.memory_space<vmem>>, vector<1x128xf32>
    %72 = arith.index_cast %69 : i32 to index
    %c0_35 = arith.constant 0 : index
    %73 = vector.load %arg3[%72, %c0_35] : memref<16x128xf32, #tpu.memory_space<vmem>>, vector<1x128xf32>
    %cst_36 = arith.constant 1.000000e+00 : f32
    %74 = arith.subf %cst_36, %60 : f32
    %75 = vector.broadcast %74 : f32 to vector<1x128xf32>
    %76 = arith.mulf %71, %75 : vector<1x128xf32>
    %77 = vector.broadcast %60 : f32 to vector<1x128xf32>
    %78 = arith.mulf %73, %77 : vector<1x128xf32>
    %79 = arith.addf %76, %78 : vector<1x128xf32>
    %80 = arith.index_cast %c2_i32 : i32 to index
    %c0_37 = arith.constant 0 : index
    %81 = vector.load %arg7[%80, %c0_37] : memref<8x128xf32, #tpu.memory_space<vmem>>, vector<1x128xf32>
    tpu.vector_store %arg7[%80, %c0_37], %79 {strides = array<i32>} : memref<8x128xf32, #tpu.memory_space<vmem>>, vector<1x128xf32>,
    %c3_i32 = arith.constant 3 : i32
    %82 = arith.addi %0, %c3_i32 : i32
    %83 = arith.index_cast %82 : i32 to index
    %84 = memref.load %arg1[%83] : memref<8xi32, #tpu.memory_space<smem>>
    %c16_i32_38 = arith.constant 16 : i32
    %85 = arith.cmpi sge, %84, %c16_i32_38 : i32
    %86 = arith.extui %85 : i1 to i32
    %87 = arith.sitofp %86 : i32 to f32
    %c16_i32_39 = arith.constant 16 : i32
    %88 = arith.cmpi sge, %84, %c16_i32_39 : i32
    %c0_i32_40 = arith.constant 0 : i32
    %89 = arith.select %88, %c0_i32_40, %84 : i32
    %c0_i32_41 = arith.constant 0 : i32
    %c15_i32_42 = arith.constant 15 : i32
    %90 = arith.maxsi %c0_i32_41, %89 : i32
    %91 = arith.minsi %c15_i32_42, %90 : i32
    %c16_i32_43 = arith.constant 16 : i32
    %92 = arith.cmpi sge, %84, %c16_i32_43 : i32
    %c16_i32_44 = arith.constant 16 : i32
    %93 = arith.subi %84, %c16_i32_44 : i32
    %c0_i32_45 = arith.constant 0 : i32
    %94 = arith.select %92, %93, %c0_i32_45 : i32
    %c0_i32_46 = arith.constant 0 : i32
    %c15_i32_47 = arith.constant 15 : i32
    %95 = arith.maxsi %c0_i32_46, %94 : i32
    %96 = arith.minsi %c15_i32_47, %95 : i32
    %97 = arith.index_cast %91 : i32 to index
    %c0_48 = arith.constant 0 : index
    %98 = vector.load %arg2[%97, %c0_48] : memref<16x128xf32, #tpu.memory_space<vmem>>, vector<1x128xf32>
    %99 = arith.index_cast %96 : i32 to index
    %c0_49 = arith.constant 0 : index
    %100 = vector.load %arg3[%99, %c0_49] : memref<16x128xf32, #tpu.memory_space<vmem>>, vector<1x128xf32>
    %cst_50 = arith.constant 1.000000e+00 : f32
    %101 = arith.subf %cst_50, %87 : f32
    %102 = vector.broadcast %101 : f32 to vector<1x128xf32>
    %103 = arith.mulf %98, %102 : vector<1x128xf32>
    %104 = vector.broadcast %87 : f32 to vector<1x128xf32>
    %105 = arith.mulf %100, %104 : vector<1x128xf32>
    %106 = arith.addf %103, %105 : vector<1x128xf32>
    %107 = arith.index_cast %c3_i32 : i32 to index
    %c0_51 = arith.constant 0 : index
    %108 = vector.load %arg7[%107, %c0_51] : memref<8x128xf32, #tpu.memory_space<vmem>>, vector<1x128xf32>
    tpu.vector_store %arg7[%107, %c0_51], %106 {strides = array<i32>} : memref<8x128xf32, #tpu.memory_space<vmem>>, vector<1x128xf32>,
    %c4_i32 = arith.constant 4 : i32
    %109 = arith.addi %0, %c4_i32 : i32
    %110 = arith.index_cast %109 : i32 to index
    %111 = memref.load %arg1[%110] : memref<8xi32, #tpu.memory_space<smem>>
    %c16_i32_52 = arith.constant 16 : i32
    %112 = arith.cmpi sge, %111, %c16_i32_52 : i32
    %113 = arith.extui %112 : i1 to i32
    %114 = arith.sitofp %113 : i32 to f32
    %c16_i32_53 = arith.constant 16 : i32
    %115 = arith.cmpi sge, %111, %c16_i32_53 : i32
    %c0_i32_54 = arith.constant 0 : i32
    %116 = arith.select %115, %c0_i32_54, %111 : i32
    %c0_i32_55 = arith.constant 0 : i32
    %c15_i32_56 = arith.constant 15 : i32
    %117 = arith.maxsi %c0_i32_55, %116 : i32
    %118 = arith.minsi %c15_i32_56, %117 : i32
    %c16_i32_57 = arith.constant 16 : i32
    %119 = arith.cmpi sge, %111, %c16_i32_57 : i32
    %c16_i32_58 = arith.constant 16 : i32
    %120 = arith.subi %111, %c16_i32_58 : i32
    %c0_i32_59 = arith.constant 0 : i32
    %121 = arith.select %119, %120, %c0_i32_59 : i32
    %c0_i32_60 = arith.constant 0 : i32
    %c15_i32_61 = arith.constant 15 : i32
    %122 = arith.maxsi %c0_i32_60, %121 : i32
    %123 = arith.minsi %c15_i32_61, %122 : i32
    %124 = arith.index_cast %118 : i32 to index
    %c0_62 = arith.constant 0 : index
    %125 = vector.load %arg2[%124, %c0_62] : memref<16x128xf32, #tpu.memory_space<vmem>>, vector<1x128xf32>
    %126 = arith.index_cast %123 : i32 to index
    %c0_63 = arith.constant 0 : index
    %127 = vector.load %arg3[%126, %c0_63] : memref<16x128xf32, #tpu.memory_space<vmem>>, vector<1x128xf32>
    %cst_64 = arith.constant 1.000000e+00 : f32
    %128 = arith.subf %cst_64, %114 : f32
    %129 = vector.broadcast %128 : f32 to vector<1x128xf32>
    %130 = arith.mulf %125, %129 : vector<1x128xf32>
    %131 = vector.broadcast %114 : f32 to vector<1x128xf32>
    %132 = arith.mulf %127, %131 : vector<1x128xf32>
    %133 = arith.addf %130, %132 : vector<1x128xf32>
    %134 = arith.index_cast %c4_i32 : i32 to index
    %c0_65 = arith.constant 0 : index
    %135 = vector.load %arg7[%134, %c0_65] : memref<8x128xf32, #tpu.memory_space<vmem>>, vector<1x128xf32>
    tpu.vector_store %arg7[%134, %c0_65], %133 {strides = array<i32>} : memref<8x128xf32, #tpu.memory_space<vmem>>, vector<1x128xf32>,
    %c5_i32 = arith.constant 5 : i32
    %136 = arith.addi %0, %c5_i32 : i32
    %137 = arith.index_cast %136 : i32 to index
    %138 = memref.load %arg1[%137] : memref<8xi32, #tpu.memory_space<smem>>
    %c16_i32_66 = arith.constant 16 : i32
    %139 = arith.cmpi sge, %138, %c16_i32_66 : i32
    %140 = arith.extui %139 : i1 to i32
    %141 = arith.sitofp %140 : i32 to f32
    %c16_i32_67 = arith.constant 16 : i32
    %142 = arith.cmpi sge, %138, %c16_i32_67 : i32
    %c0_i32_68 = arith.constant 0 : i32
    %143 = arith.select %142, %c0_i32_68, %138 : i32
    %c0_i32_69 = arith.constant 0 : i32
    %c15_i32_70 = arith.constant 15 : i32
    %144 = arith.maxsi %c0_i32_69, %143 : i32
    %145 = arith.minsi %c15_i32_70, %144 : i32
    %c16_i32_71 = arith.constant 16 : i32
    %146 = arith.cmpi sge, %138, %c16_i32_71 : i32
    %c16_i32_72 = arith.constant 16 : i32
    %147 = arith.subi %138, %c16_i32_72 : i32
    %c0_i32_73 = arith.constant 0 : i32
    %148 = arith.select %146, %147, %c0_i32_73 : i32
    %c0_i32_74 = arith.constant 0 : i32
    %c15_i32_75 = arith.constant 15 : i32
    %149 = arith.maxsi %c0_i32_74, %148 : i32
    %150 = arith.minsi %c15_i32_75, %149 : i32
    %151 = arith.index_cast %145 : i32 to index
    %c0_76 = arith.constant 0 : index
    %152 = vector.load %arg2[%151, %c0_76] : memref<16x128xf32, #tpu.memory_space<vmem>>, vector<1x128xf32>
    %153 = arith.index_cast %150 : i32 to index
    %c0_77 = arith.constant 0 : index
    %154 = vector.load %arg3[%153, %c0_77] : memref<16x128xf32, #tpu.memory_space<vmem>>, vector<1x128xf32>
    %cst_78 = arith.constant 1.000000e+00 : f32
    %155 = arith.subf %cst_78, %141 : f32
    %156 = vector.broadcast %155 : f32 to vector<1x128xf32>
    %157 = arith.mulf %152, %156 : vector<1x128xf32>
    %158 = vector.broadcast %141 : f32 to vector<1x128xf32>
    %159 = arith.mulf %154, %158 : vector<1x128xf32>
    %160 = arith.addf %157, %159 : vector<1x128xf32>
    %161 = arith.index_cast %c5_i32 : i32 to index
    %c0_79 = arith.constant 0 : index
    %162 = vector.load %arg7[%161, %c0_79] : memref<8x128xf32, #tpu.memory_space<vmem>>, vector<1x128xf32>
    tpu.vector_store %arg7[%161, %c0_79], %160 {strides = array<i32>} : memref<8x128xf32, #tpu.memory_space<vmem>>, vector<1x128xf32>,
    %c6_i32 = arith.constant 6 : i32
    %163 = arith.addi %0, %c6_i32 : i32
    %164 = arith.index_cast %163 : i32 to index
    %165 = memref.load %arg1[%164] : memref<8xi32, #tpu.memory_space<smem>>
    %c16_i32_80 = arith.constant 16 : i32
    %166 = arith.cmpi sge, %165, %c16_i32_80 : i32
    %167 = arith.extui %166 : i1 to i32
    %168 = arith.sitofp %167 : i32 to f32
    %c16_i32_81 = arith.constant 16 : i32
    %169 = arith.cmpi sge, %165, %c16_i32_81 : i32
    %c0_i32_82 = arith.constant 0 : i32
    %170 = arith.select %169, %c0_i32_82, %165 : i32
    %c0_i32_83 = arith.constant 0 : i32
    %c15_i32_84 = arith.constant 15 : i32
    %171 = arith.maxsi %c0_i32_83, %170 : i32
    %172 = arith.minsi %c15_i32_84, %171 : i32
    %c16_i32_85 = arith.constant 16 : i32
    %173 = arith.cmpi sge, %165, %c16_i32_85 : i32
    %c16_i32_86 = arith.constant 16 : i32
    %174 = arith.subi %165, %c16_i32_86 : i32
    %c0_i32_87 = arith.constant 0 : i32
    %175 = arith.select %173, %174, %c0_i32_87 : i32
    %c0_i32_88 = arith.constant 0 : i32
    %c15_i32_89 = arith.constant 15 : i32
    %176 = arith.maxsi %c0_i32_88, %175 : i32
    %177 = arith.minsi %c15_i32_89, %176 : i32
    %178 = arith.index_cast %172 : i32 to index
    %c0_90 = arith.constant 0 : index
    %179 = vector.load %arg2[%178, %c0_90] : memref<16x128xf32, #tpu.memory_space<vmem>>, vector<1x128xf32>
    %180 = arith.index_cast %177 : i32 to index
    %c0_91 = arith.constant 0 : index
    %181 = vector.load %arg3[%180, %c0_91] : memref<16x128xf32, #tpu.memory_space<vmem>>, vector<1x128xf32>
    %cst_92 = arith.constant 1.000000e+00 : f32
    %182 = arith.subf %cst_92, %168 : f32
    %183 = vector.broadcast %182 : f32 to vector<1x128xf32>
    %184 = arith.mulf %179, %183 : vector<1x128xf32>
    %185 = vector.broadcast %168 : f32 to vector<1x128xf32>
    %186 = arith.mulf %181, %185 : vector<1x128xf32>
    %187 = arith.addf %184, %186 : vector<1x128xf32>
    %188 = arith.index_cast %c6_i32 : i32 to index
    %c0_93 = arith.constant 0 : index
    %189 = vector.load %arg7[%188, %c0_93] : memref<8x128xf32, #tpu.memory_space<vmem>>, vector<1x128xf32>
    tpu.vector_store %arg7[%188, %c0_93], %187 {strides = array<i32>} : memref<8x128xf32, #tpu.memory_space<vmem>>, vector<1x128xf32>,
    %c7_i32 = arith.constant 7 : i32
    %190 = arith.addi %0, %c7_i32 : i32
    %191 = arith.index_cast %190 : i32 to index
    %192 = memref.load %arg1[%191] : memref<8xi32, #tpu.memory_space<smem>>
    %c16_i32_94 = arith.constant 16 : i32
    %193 = arith.cmpi sge, %192, %c16_i32_94 : i32
    %194 = arith.extui %193 : i1 to i32
    %195 = arith.sitofp %194 : i32 to f32
    %c16_i32_95 = arith.constant 16 : i32
    %196 = arith.cmpi sge, %192, %c16_i32_95 : i32
    %c0_i32_96 = arith.constant 0 : i32
    %197 = arith.select %196, %c0_i32_96, %192 : i32
    %c0_i32_97 = arith.constant 0 : i32
    %c15_i32_98 = arith.constant 15 : i32
    %198 = arith.maxsi %c0_i32_97, %197 : i32
    %199 = arith.minsi %c15_i32_98, %198 : i32
    %c16_i32_99 = arith.constant 16 : i32
    %200 = arith.cmpi sge, %192, %c16_i32_99 : i32
    %c16_i32_100 = arith.constant 16 : i32
    %201 = arith.subi %192, %c16_i32_100 : i32
    %c0_i32_101 = arith.constant 0 : i32
    %202 = arith.select %200, %201, %c0_i32_101 : i32
    %c0_i32_102 = arith.constant 0 : i32
    %c15_i32_103 = arith.constant 15 : i32
    %203 = arith.maxsi %c0_i32_102, %202 : i32
    %204 = arith.minsi %c15_i32_103, %203 : i32
    %205 = arith.index_cast %199 : i32 to index
    %c0_104 = arith.constant 0 : index
    %206 = vector.load %arg2[%205, %c0_104] : memref<16x128xf32, #tpu.memory_space<vmem>>, vector<1x128xf32>
    %207 = arith.index_cast %204 : i32 to index
    %c0_105 = arith.constant 0 : index
    %208 = vector.load %arg3[%207, %c0_105] : memref<16x128xf32, #tpu.memory_space<vmem>>, vector<1x128xf32>
    %cst_106 = arith.constant 1.000000e+00 : f32
    %209 = arith.subf %cst_106, %195 : f32
    %210 = vector.broadcast %209 : f32 to vector<1x128xf32>
    %211 = arith.mulf %206, %210 : vector<1x128xf32>
    %212 = vector.broadcast %195 : f32 to vector<1x128xf32>
    %213 = arith.mulf %208, %212 : vector<1x128xf32>
    %214 = arith.addf %211, %213 : vector<1x128xf32>
    %215 = arith.index_cast %c7_i32 : i32 to index
    %c0_107 = arith.constant 0 : index
    %216 = vector.load %arg7[%215, %c0_107] : memref<8x128xf32, #tpu.memory_space<vmem>>, vector<1x128xf32>
    tpu.vector_store %arg7[%215, %c0_107], %214 {strides = array<i32>} : memref<8x128xf32, #tpu.memory_space<vmem>>, vector<1x128xf32>,
    %c8_i32_108 = arith.constant 8 : i32
    %c0_109 = arith.constant 0 : index
    %c0_110 = arith.constant 0 : index
    %217 = vector.load %arg7[%c0_109, %c0_110] : memref<8x128xf32, #tpu.memory_space<vmem>>, vector<8x128xf32>
    %c0_111 = arith.constant 0 : index
    %c0_112 = arith.constant 0 : index
    %218 = vector.load %arg4[%c0_111, %c0_112] : memref<128x128xf32, #tpu.memory_space<vmem>>, vector<128x128xf32>
    %cst_113 = arith.constant dense<0.000000e+00> : vector<8x128xf32>
    %219 = tpu.matmul %217, %218, %cst_113 {dimension_numbers = #tpu.dot_dimension_numbers<[1], [0], [0], [1], [0, 0, 1, 1], [], []>} : vector<8x128xf32>, vector<128x128xf32>, vector<8x128xf32> -> vector<8x128xf32>
    %c0_114 = arith.constant 0 : index
    %c0_115 = arith.constant 0 : index
    %220 = vector.load %arg5[%c0_114, %c0_115] : memref<1x128xf32, #tpu.memory_space<vmem>>, vector<1x128xf32>
    %221 = vector.broadcast %220 : vector<1x128xf32> to vector<8x128xf32>
    %222 = arith.addf %219, %221 : vector<8x128xf32>
    %223 = tpu.iota {dimensions = array<i32: 1>} : vector<8x128xi32>
    %c16_i32_116 = arith.constant 16 : i32
    %224 = vector.broadcast %c16_i32_116 : i32 to vector<8x128xi32>
    %225 = arith.cmpi slt, %223, %224 : vector<8x128xi32>
    %cst_117 = arith.constant -1.000000e+30 : f32
    %226 = vector.broadcast %cst_117 : f32 to vector<8x128xf32>
    %227 = arith.select %225, %222, %226 : vector<8x128xi1>, vector<8x128xf32>
    %cst_118 = arith.constant dense<0xFF800000> : vector<8xf32>
    %228 = vector.multi_reduction <maximumf>, %227, %cst_118 [1] : vector<8x128xf32> to vector<8xf32>
    %229 = vector.shape_cast %228 : vector<8xf32> to vector<8x1xf32>
    %230 = vector.broadcast %229 : vector<8x1xf32> to vector<8x128xf32>
    %231 = arith.subf %227, %230 : vector<8x128xf32>
    %232 = math.exp %231 : vector<8x128xf32>
    %cst_119 = arith.constant dense<0.000000e+00> : vector<8xf32>
    %233 = vector.multi_reduction <add>, %232, %cst_119 [1] : vector<8x128xf32> to vector<8xf32>
    %234 = vector.shape_cast %233 : vector<8xf32> to vector<8x1xf32>
    %235 = tpu.reciprocal %234 : vector<8x1xf32> -> vector<8x1xf32>
    %236 = vector.broadcast %235 : vector<8x1xf32> to vector<8x128xf32>
    %237 = arith.mulf %232, %236 : vector<8x128xf32>
    %c0_120 = arith.constant 0 : index
    %c0_121 = arith.constant 0 : index
    %238 = vector.load %arg6[%c0_120, %c0_121] : memref<8x128xf32, #tpu.memory_space<vmem>>, vector<8x128xf32>
    tpu.vector_store %arg6[%c0_120, %c0_121], %237 {strides = array<i32>} : memref<8x128xf32, #tpu.memory_space<vmem>>, vector<8x128xf32>,
    return
  }
  func.func @transform_0(%arg0: i32, %arg1: memref<8xi32, #tpu.memory_space<smem>>) -> (i32, i32) {
    %c0_i32 = arith.constant 0 : i32
    %c0_i32_0 = arith.constant 0 : i32
    %c0_i32_1 = arith.constant 0 : i32
    return %c0_i32, %c0_i32_0 : i32, i32
  }
  func.func @transform_1(%arg0: i32, %arg1: memref<8xi32, #tpu.memory_space<smem>>) -> (i32, i32) {
    %c0_i32 = arith.constant 0 : i32
    %c0_i32_0 = arith.constant 0 : i32
    %c0_i32_1 = arith.constant 0 : i32
    return %c0_i32, %c0_i32_0 : i32, i32
  }
  func.func @transform_2(%arg0: i32, %arg1: memref<8xi32, #tpu.memory_space<smem>>) -> (i32, i32) {
    %c0_i32 = arith.constant 0 : i32
    %c0_i32_0 = arith.constant 0 : i32
    %c0_i32_1 = arith.constant 0 : i32
    return %c0_i32, %c0_i32_0 : i32, i32
  }
  func.func @transform_3(%arg0: i32, %arg1: memref<8xi32, #tpu.memory_space<smem>>) -> (i32, i32) {
    %c0_i32 = arith.constant 0 : i32
    %c0_i32_0 = arith.constant 0 : i32
    %c0_i32_1 = arith.constant 0 : i32
    return %c0_i32, %c0_i32_0 : i32, i32
  }
  func.func @transform_4(%arg0: i32, %arg1: memref<8xi32, #tpu.memory_space<smem>>) -> (i32, i32) {
    %c0_i32 = arith.constant 0 : i32
    %c0_i32_0 = arith.constant 0 : i32
    return %arg0, %c0_i32 : i32, i32
  }
}

</mosaic_0001>

<bundles_post_ra>
// kernel: tpu_custom_call.1
= control target key start
LH: loop header
LB: loop body
LE: loop exit
PB: predicated region body
PF: predicated region fallthrough
CT: control target
= control target key end

     0   :  { %s957_s0 = inlined_call_operand.hbm [shape: s32[8], index: 0, kind: input, shape index: {}]   ;;  %s958_s1 = inlined_call_operand.hbm [shape: f32[16,128], index: 1, kind: input, shape index: {}]   ;;  %s959_s2 = inlined_call_operand.hbm [shape: f32[16,128], index: 2, kind: input, shape index: {}]   ;;  %s960_s3 = inlined_call_operand.hbm [shape: f32[128,128], index: 3, kind: input, shape index: {}]   ;;  %s961_s4 = inlined_call_operand.vmem [shape: f32[1,128], index: 4, kind: input, shape index: {}]   ;;  %s962_s5 = inlined_call_operand.hbm [shape: f32[8,128], index: 5, kind: output, shape index: {}]  }
   0x1   :  { %s638_s20 = scalar_lea.hbm %s957_s0, 16 }
   0x2   :  { %p639_p0 = scmp.ne.s32.totalorder %s957_s0, %s638_s20  ;;  %p642_p1 = scmp.lt.u32.totalorder %s638_s20, %s957_s0 }
   0x4   :  { %p644_p2 = pnand %p642_p1, %p639_p0 }
   0x6   :  { %647 = shalt.err (!%p644_p2)  }
   0x7   :  { %s744_s25 = smov [#allocation4]  }
   0x8   :  { %11 = dma.hbm_to_smem %s957_s0, 16, %s744_s25, [#allocation3] }
   0x9   :  { %736 = dma.done.wait [#allocation3], 16 }
   0xa   :  { %737 = vsyncadd [#allocation3], 4294967280 }
   0xb   :  { %13 = sfence }
   0xc   :  { %14 = vsyncpa [#allocation6], 0 }
   0xd   :  { %15 = vsyncpa [#allocation9], 0 }
   0xe   :  { %16 = vsyncpa [#allocation7], 0  ;;  %s745_s28 = smov [#allocation8]   ;;  %s746_s30 = smov [#allocation5]  }
   0xf   :  { %s34_s29 = sshll.u32 %s745_s28, 4  ;;  %s22_s6 = sshll.u32 %s746_s30, 4  ;;  %s35_s29 = int_to_ptr.vmem [resolvable:$true] %s34_s29  ;;  %s796_s6 = int_to_ptr.vmem [resolvable:$true] %s22_s6 }
  0x10   :  { %s648_s9 = scalar_lea.hbm %s959_s2, 256 }
  0x11   :  { %p649_p3 = scmp.ne.s32.totalorder %s959_s2, %s648_s9  ;;  %p652_p4 = scmp.lt.u32.totalorder %s648_s9, %s959_s2 }
  0x13   :  { %p654_p5 = pnand %p652_p4, %p649_p3 }
  0x15   :  { %657 = shalt.err (!%p654_p5)
}
  0x16   :  { %s658_s13 = scalar_lea.vmem %s35_s29, 256  ;;  %p663_p7 = scmp.lt.s32.totalorder %s35_s29, %s35_s29 }
  0x17   :  { %p659_p6 = scmp.ne.s32.totalorder %s35_s29, %s658_s13  ;;  %p664_p8 = scmp.lt.s32.totalorder %s658_s13, %s658_s13 }
  0x19   :  { %p665_p9 = por %p664_p8, %p663_p7 }
  0x1b   :  { %p666_p10 = pnand %p665_p9, %p659_p6 }
  0x1d   :  { %669 = shalt.err (!%p666_p10)
}
  0x1e   :  { %s747_s14 = smov 128   ;;  %s748_s15 = smov 8  }
  0x1f   :  { %40 = dma.hbm_to_vmem [thread:$0]  %s959_s2, 256, %s35_s29, [#allocation9], %s747_s14, %s747_s14, %s748_s15  }
  0x20   :  { %s670_s20 = scalar_lea.hbm %s958_s1, 256 }
  0x21   :  { %p671_p11 = scmp.ne.s32.totalorder %s958_s1, %s670_s20  ;;  %p674_p12 = scmp.lt.u32.totalorder %s670_s20, %s958_s1 }
  0x23   :  { %p676_p13 = pnand %p674_p12, %p671_p11 }
  0x25   :  { %679 = shalt.err (!%p676_p13)
}
  0x26   :  { %s680_s25 = scalar_lea.vmem %s796_s6, 256  ;;  %p685_p1 = scmp.lt.s32.totalorder %s796_s6, %s796_s6 }
  0x27   :  { %p681_p0 = scmp.ne.s32.totalorder %s796_s6, %s680_s25  ;;  %p686_p2 = scmp.lt.s32.totalorder %s680_s25, %s680_s25 }
  0x29   :  { %p687_p3 = por %p686_p2, %p685_p1 }
  0x2b   :  { %p688_p4 = pnand %p687_p3, %p681_p0 }
  0x2d   :  { %691 = shalt.err (!%p688_p4)
}
  0x2e   :  { %28 = dma.hbm_to_vmem [thread:$0]  %s958_s1, 256, %s796_s6, [#allocation6], %s747_s14, %s747_s14, %s748_s15  }
  0x2f   :  { %s749_s27 = smov [#allocation10]   ;;  %s692_s7 = scalar_lea.hbm %s960_s3, 2048 }
  0x30   :  { %s46_s28 = sshll.u32 %s749_s27, 4  ;;  %p693_p5 = scmp.ne.s32.totalorder %s960_s3, %s692_s7  ;;  %s47_s28 = int_to_ptr.vmem [resolvable:$true] %s46_s28 }
  0x31   :  { %p696_p6 = scmp.lt.u32.totalorder %s692_s7, %s960_s3 }
  0x33   :  { %p698_p7 = pnand %p696_p6, %p693_p5 }
  0x35   :  { %701 = shalt.err (!%p698_p7)
}
  0x36   :  { %s702_s0 = scalar_lea.vmem %s47_s28, 2048  ;;  %p707_p9 = scmp.lt.s32.totalorder %s47_s28, %s47_s28 }
  0x37   :  { %p703_p8 = scmp.ne.s32.totalorder %s47_s28, %s702_s0  ;;  %p708_p10 = scmp.lt.s32.totalorder %s702_s0, %s702_s0 }
  0x39   :  { %p709_p11 = por %p708_p10, %p707_p9 }
  0x3b   :  { %p710_p12 = pnand %p709_p11, %p703_p8 }
  0x3d   :  { %713 = shalt.err (!%p710_p12)
}
  0x3e   :  { %52 = dma.hbm_to_vmem [thread:$0]  %s960_s3, 2048, %s47_s28, [#allocation9], %s747_s14, %s747_s14, %s748_s15  }
  0x3f   :  { %738 = dma.done.wait [#allocation6], 256  }
  0x40   :  { %739 = vsyncadd [#allocation6], 4294967040 }
  0x41   :  { %740 = dma.done.wait [#allocation9], 2304  }
  0x42   :  { %741 = vsyncadd [#allocation9], 4294964992  ;;  %v750_v0 = vmov 0.0|0.0   ;;  %vm751_vm0 = vmmov 0   ;;  %v752_v1 = vmov 0.0   ;;  %s65_s12 = sld [smem:[#allocation4]] }
  0x43   :  { %600 = vmatprep.subr.bf16.mxu0 %v750_v0  ;;  %597 = vmatprep.mubr.msk.f32.mxu0 %vm751_vm0, %v752_v1  ;;  %s849_s13 = sld [smem:[#allocation4 + $0x1]]  ;;  %s851_s16 = sld [smem:[#allocation4 + $0x2]]  ;;  %v281_v2 = vld [vmem:[#allocation10] sm:$0xff]  ;;  %v282_v3 = vld [vmem:[#allocation10 + $0x8] sm:$0xff]  ;;  %v283_v4 = vld [vmem:[#allocation10 + $0x10] sm:$0xff] }
  0x44   :  { %s853_s17 = sld [smem:[#allocation4 + $0x3]]  ;;  %s855_s18 = sld [smem:[#allocation4 + $0x4]]  ;;  %v601_v5 = vpack.c.bf16 %v282_v3, %v281_v2  ;;  %v284_v6 = vld [vmem:[#allocation10 + $0x18] sm:$0xff]  ;;  %v285_v8 = vld [vmem:[#allocation10 + $0x20] sm:$0xff]  ;;  %v286_v9 = vld [vmem:[#allocation10 + $0x28] sm:$0xff] }
  0x45   :  { %s857_s3 = sld [smem:[#allocation4 + $0x5]]  ;;  %s859_s14 = sld [smem:[#allocation4 + $0x6]]  ;;  %v604_v7 = vpack.c.bf16 %v284_v6, %v283_v4  ;;  %v607_v10 = vpack.c.bf16 %v286_v9, %v285_v8  ;;  %v287_v11 = vld [vmem:[#allocation10 + $0x30] sm:$0xff]  ;;  %v288_v12 = vld [vmem:[#allocation10 + $0x38] sm:$0xff]  ;;  %v289_v14 = vld [vmem:[#allocation10 + $0x40] sm:$0xff] }
  0x46   :  { %s861_s19 = sld [smem:[#allocation4 + $0x7]]  ;;  %602 = vmatpush3.bf16.msra.mxu0 %v601_v5  ;;  %v610_v13 = vpack.c.bf16 %v288_v12, %v287_v11  ;;  %v290_v15 = vld [vmem:[#allocation10 + $0x48] sm:$0xff]  ;;  %v291_v22 = vld [vmem:[#allocation10 + $0x50] sm:$0xff]  ;;  %v292_v23 = vld [vmem:[#allocation10 + $0x58] sm:$0xff] }
  0x47   :  { %603 = vmatprep.subr.bf16.mxu0 %v750_v0  ;;  %v613_v20 = vpack.c.bf16 %v290_v15, %v289_v14  ;;  %v616_v26 = vpack.c.bf16 %v292_v23, %v291_v22  ;;  %v293_v27 = vld [vmem:[#allocation10 + $0x60] sm:$0xff]  ;;  %v294_v28 = vld [vmem:[#allocation10 + $0x68] sm:$0xff]  ;;  %v295_v30 = vld [vmem:[#allocation10 + $0x70] sm:$0xff] }
  0x48   :  { %p66_p13 = scmp.ge.s32.totalorder %s65_s12, 16  ;;  %s425_s15 = sadd.s32 4294967280, %s65_s12  ;;  %v619_v29 = vpack.c.bf16 %v294_v28, %v293_v27  ;;  %v296_v31 = vld [vmem:[#allocation10 + $0x78] sm:$0xff] }
  0x49   :  { %p93_p0 = scmp.ge.s32.totalorder %s849_s13, 16  ;;  %s437_s2 = sadd.s32 4294967280, %s849_s13  ;;  %v622_v36 = vpack.c.bf16 %v296_v31, %v295_v30 }
  0x4a   :  { %s864_s20 = scalar_select %p66_p13, 1, 0  ;;  %605 = vmatpush3.bf16.msra.mxu0 %v604_v7 }
  0x4b   :  { %s69_s21 = scalar_select %p66_p13, 0, %s65_s12  ;;  %606 = vmatprep.subr.bf16.mxu0 %v750_v0 }
  0x4c   :  { %s68_s22 = scvt.s32.f32 %s864_s20  ;;  %s964_s15 = smov (!%p66_p13, %s425_s15), 0 }
  0x4d   :  { %p70_p1 = scmp.gt.s32.totalorder %s69_s21, 0  ;;  %p420_p2 = scmp.lt.s32.totalorder %s69_s21, 15 }
  0x4e   :  { %p76_p3 = scmp.gt.s32.totalorder %s964_s15, 0  ;;  %p426_p4 = scmp.lt.s32.totalorder %s964_s15, 15  ;;  %608 = vmatpush3.bf16.msra.mxu0 %v607_v10  ;;  %v87_v18 = vstv %s68_s22 }
  0x4f   :  { %s966_s21 = smov (!%p70_p1, %s69_s21), 0  ;;  %s84_s23 = ssub.f32 1.0, %s68_s22  ;;  %609 = vmatprep.subr.bf16.mxu0 %v750_v0 }
  0x50   :  { %s968_s21 = smov (!%p420_p2, %s966_s21), 15  ;;  %s970_s15 = smov (!%p76_p3, %s964_s15), 0 }
  0x51   :  { %s972_s15 = smov (!%p426_p4, %s970_s15), 15  ;;  %s80_s24 = scalar_lea.vmem [#allocation5], %s968_s21  ;;  %v85_v17 = vstv %s84_s23 }
  0x52   :  { %v81_v16 = vld [vmem:[%s80_s24] sm:$0x1]  ;;  %s875_s25 = scalar_select %p93_p0, 1, 0  ;;  %611 = vmatpush3.bf16.msra.mxu0 %v610_v13 }
  0x53   :  { %v86_v19 = vmul.f32 %v85_v17, %v81_v16  ;;  %s82_s26 = scalar_lea.vmem [#allocation8], %s972_s15  ;;  %p120_p5 = scmp.ge.s32.totalorder %s851_s16, 16  ;;  %612 = vmatprep.subr.bf16.mxu0 %v750_v0 }
  0x54   :  { %v83_v21 = vld [vmem:[%s82_s26] sm:$0x1]  ;;  %s95_s27 = scvt.s32.f32 %s875_s25  ;;  %s974_s2 = smov (!%p93_p0, %s437_s2), 0 }
  0x55   :  { %v88_v24 = vmul.f32 %v87_v18, %v83_v21  ;;  %s96_s28 = scalar_select %p93_p0, 0, %s849_s13  ;;  %v515_v21 = vld [vmem:[%s961_s4] ss:$0 sm:$0xff] }
  0x56   :  { %614 = vmatpush3.bf16.msra.mxu0 %v613_v20  ;;  %p103_p8 = scmp.gt.s32.totalorder %s974_s2, 0  ;;  %p438_p9 = scmp.lt.s32.totalorder %s974_s2, 15  ;;  %v114_v32 = vstv %s95_s27 }
  0x57   :  { %v89_v25 = vadd.f32 %v88_v24, %v86_v19  ;;  %p97_p6 = scmp.gt.s32.totalorder %s96_s28, 0  ;;  %p432_p7 = scmp.lt.s32.totalorder %s96_s28, 15  ;;  %615 = vmatprep.subr.bf16.mxu0 %v750_v0  ;;  %v374_v19 = vlaneseq }
  0x58   :  { %s978_s2 = smov (!%p103_p8, %s974_s2), 0  ;;  %s111_s29 = ssub.f32 1.0, %s95_s27 }
  0x59   :  { %90 = vst [vmem:[#allocation2] sm:$0x1] %v89_v25  ;;  %s976_s28 = smov (!%p97_p6, %s96_s28), 0  ;;  %s982_s2 = smov (!%p438_p9, %s978_s2), 15  ;;  %v375_v20 = vand.u32 127, %v374_v19 }
  0x5a   :  { %s980_s28 = smov (!%p432_p7, %s976_s28), 15  ;;  %617 = vmatpush3.bf16.msra.mxu0 %v616_v26  ;;  %s449_s7 = sadd.s32 4294967280, %s851_s16  ;;  %v112_v35 = vstv %s111_s29 }
  0x5b   :  { %618 = vmatprep.subr.bf16.mxu0 %v750_v0  ;;  %s107_s30 = scalar_lea.vmem [#allocation5], %s980_s28  ;;  %s109_s8 = scalar_lea.vmem [#allocation8], %s982_s2  ;;  %vm376_vm1 = vcmp.lt.s32.totalorder %v375_v20, 16 }
  0x5c   :  { %v108_v33 = vld [vmem:[%s107_s30] sm:$0x1]  ;;  %s121_s9 = scalar_select %p120_p5, 1, 0 }
  0x5d   :  { %v110_v34 = vld [vmem:[%s109_s8] sm:$0x1]  ;;  %v113_v37 = vmul.f32 %v112_v35, %v108_v33  ;;  %s123_s10 = scalar_select %p120_p5, 0, %s851_s16 }
  0x5e   :  { %620 = vmatpush3.bf16.msra.mxu0 %v619_v29  ;;  %v115_v38 = vmul.f32 %v114_v32, %v110_v34  ;;  %s122_s11 = scvt.s32.f32 %s121_s9  ;;  %p147_p10 = scmp.ge.s32.totalorder %s853_s17, 16 }
  0x5f   :  { %621 = vmatprep.subr.bf16.mxu0 %v750_v0  ;;  %p124_p11 = scmp.gt.s32.totalorder %s123_s10, 0  ;;  %p444_p12 = scmp.lt.s32.totalorder %s123_s10, 15 }
  0x60   :  { %v116_v39 = vadd.f32 %v115_v38, %v113_v37  ;;  %s984_s7 = smov (!%p120_p5, %s449_s7), 0  ;;  %s138_s0 = ssub.f32 1.0, %s122_s11  ;;  %v141_v42 = vstv %s122_s11 }
  0x61   :  { %s986_s10 = smov (!%p124_p11, %s123_s10), 0  ;;  %p130_p13 = scmp.gt.s32.totalorder %s984_s7, 0 }
  0x62   :  { %623 = vmatpush3.bf16.msra.mxu0 %v622_v36  ;;  %117 = vst [vmem:[#allocation2 + $0x1] sm:$0x1] %v116_v39  ;;  %p450_p0 = scmp.lt.s32.totalorder %s984_s7, 15  ;;  %s988_s10 = smov (!%p444_p12, %s986_s10), 15  ;;  %v139_v41 = vstv %s138_s0 }
  0x63   :  { %s990_s7 = smov (!%p130_p13, %s984_s7), 0  ;;  %s134_s1 = scalar_lea.vmem [#allocation5], %s988_s10 }
  0x64   :  { %s992_s7 = smov (!%p450_p0, %s990_s7), 15  ;;  %v135_v40 = vld [vmem:[%s134_s1] sm:$0x1]  ;;  %s461_s12 = sadd.s32 4294967280, %s853_s17 }
  0x65   :  { %s148_s6 = scalar_select %p147_p10, 1, 0  ;;  %v140_v43 = vmul.f32 %v139_v41, %v135_v40 }
  0x66   :  { %s136_s13 = scalar_lea.vmem [#allocation8], %s992_s7  ;;  %p174_p1 = scmp.ge.s32.totalorder %s855_s18, 16 }
  0x67   :  { %v137_v44 = vld [vmem:[%s136_s13] sm:$0x1]  ;;  %s149_s16 = scvt.s32.f32 %s148_s6  ;;  %s994_s12 = smov (!%p147_p10, %s461_s12), 0 }
  0x68   :  { %v142_v45 = vmul.f32 %v141_v42, %v137_v44  ;;  %s150_s15 = scalar_select %p147_p10, 0, %s853_s17 }
  0x69   :  { %p157_p4 = scmp.gt.s32.totalorder %s994_s12, 0  ;;  %p462_p5 = scmp.lt.s32.totalorder %s994_s12, 15  ;;  %v168_v47 = vstv %s149_s16 }
  0x6a   :  { %v143_v46 = vadd.f32 %v142_v45, %v140_v43  ;;  %p151_p2 = scmp.gt.s32.totalorder %s150_s15, 0  ;;  %p456_p3 = scmp.lt.s32.totalorder %s150_s15, 15 }
  0x6b   :  { %s998_s12 = smov (!%p157_p4, %s994_s12), 0  ;;  %s165_s20 = ssub.f32 1.0, %s149_s16 }
  0x6c   :  { %144 = vst [vmem:[#allocation2 + $0x2] sm:$0x1] %v143_v46  ;;  %s996_s15 = smov (!%p151_p2, %s150_s15), 0  ;;  %s1002_s12 = smov (!%p462_p5, %s998_s12), 15 }
  0x6d   :  { %s1000_s15 = smov (!%p456_p3, %s996_s15), 15  ;;  %s473_s21 = sadd.s32 4294967280, %s855_s18  ;;  %v166_v50 = vstv %s165_s20 }
  0x6e   :  { %s161_s17 = scalar_lea.vmem [#allocation5], %s1000_s15  ;;  %s163_s22 = scalar_lea.vmem [#allocation8], %s1002_s12 }
  0x6f   :  { %v162_v48 = vld [vmem:[%s161_s17] sm:$0x1]  ;;  %s175_s23 = scalar_select %p174_p1, 1, 0 }
  0x70   :  { %v164_v49 = vld [vmem:[%s163_s22] sm:$0x1]  ;;  %v167_v51 = vmul.f32 %v166_v50, %v162_v48  ;;  %s177_s24 = scalar_select %p174_p1, 0, %s855_s18 }
  0x71   :  { %v169_v52 = vmul.f32 %v168_v47, %v164_v49  ;;  %s176_s25 = scvt.s32.f32 %s175_s23  ;;  %p201_p6 = scmp.ge.s32.totalorder %s857_s3, 16 }
  0x72   :  { %p178_p7 = scmp.gt.s32.totalorder %s177_s24, 0  ;;  %p468_p8 = scmp.lt.s32.totalorder %s177_s24, 15 }
  0x73   :  { %v170_v53 = vadd.f32 %v169_v52, %v167_v51  ;;  %s1004_s21 = smov (!%p174_p1, %s473_s21), 0  ;;  %s192_s2 = ssub.f32 1.0, %s176_s25  ;;  %v195_v56 = vstv %s176_s25 }
  0x74   :  { %s1006_s24 = smov (!%p178_p7, %s177_s24), 0  ;;  %p184_p9 = scmp.gt.s32.totalorder %s1004_s21, 0 }
  0x75   :  { %171 = vst [vmem:[#allocation2 + $0x3] sm:$0x1] %v170_v53  ;;  %p474_p10 = scmp.lt.s32.totalorder %s1004_s21, 15  ;;  %s1008_s24 = smov (!%p468_p8, %s1006_s24), 15  ;;  %v193_v55 = vstv %s192_s2 }
  0x76   :  { %s1010_s21 = smov (!%p184_p9, %s1004_s21), 0  ;;  %s188_s26 = scalar_lea.vmem [#allocation5], %s1008_s24 }
  0x77   :  { %s1012_s21 = smov (!%p474_p10, %s1010_s21), 15  ;;  %v189_v54 = vld [vmem:[%s188_s26] sm:$0x1]  ;;  %s485_s27 = sadd.s32 4294967280, %s857_s3 }
  0x78   :  { %s202_s18 = scalar_select %p201_p6, 1, 0  ;;  %v194_v57 = vmul.f32 %v193_v55, %v189_v54 }
  0x79   :  { %s190_s28 = scalar_lea.vmem [#allocation8], %s1012_s21  ;;  %p228_p11 = scmp.ge.s32.totalorder %s859_s14, 16 }
  0x7a   :  { %v191_v58 = vld [vmem:[%s190_s28] sm:$0x1]  ;;  %s203_s29 = scvt.s32.f32 %s202_s18  ;;  %s1014_s27 = smov (!%p201_p6, %s485_s27), 0 }
  0x7b   :  { %v196_v59 = vmul.f32 %v195_v56, %v191_v58  ;;  %s204_s30 = scalar_select %p201_p6, 0, %s857_s3 }
  0x7c   :  { %p211_p0 = scmp.gt.s32.totalorder %s1014_s27, 0  ;;  %p486_p1 = scmp.lt.s32.totalorder %s1014_s27, 15  ;;  %v222_v61 = vstv %s203_s29 }
  0x7d   :  { %v197_v60 = vadd.f32 %v196_v59, %v194_v57  ;;  %p205_p12 = scmp.gt.s32.totalorder %s204_s30, 0  ;;  %p480_p13 = scmp.lt.s32.totalorder %s204_s30, 15 }
  0x7e   :  { %s1018_s27 = smov (!%p211_p0, %s1014_s27), 0  ;;  %s219_s7 = ssub.f32 1.0, %s203_s29 }
  0x7f   :  { %198 = vst [vmem:[#allocation2 + $0x4] sm:$0x1] %v197_v60  ;;  %s1016_s30 = smov (!%p205_p12, %s204_s30), 0  ;;  %s1022_s27 = smov (!%p486_p1, %s1018_s27), 15 }
  0x80   :  { %s1020_s30 = smov (!%p480_p13, %s1016_s30), 15  ;;  %s497_s8 = sadd.s32 4294967280, %s859_s14  ;;  %v220_v0 = vstv %s219_s7 }
  0x81   :  { %s215_s3 = scalar_lea.vmem [#allocation5], %s1020_s30  ;;  %s217_s9 = scalar_lea.vmem [#allocation8], %s1022_s27 }
  0x82   :  { %v216_v62 = vld [vmem:[%s215_s3] sm:$0x1]  ;;  %s229_s10 = scalar_select %p228_p11, 1, 0 }
  0x83   :  { %v218_v63 = vld [vmem:[%s217_s9] sm:$0x1]  ;;  %v221_v1 = vmul.f32 %v220_v0, %v216_v62  ;;  %s231_s11 = scalar_select %p228_p11, 0, %s859_s14 }
  0x84   :  { %v223_v2 = vmul.f32 %v222_v61, %v218_v63  ;;  %s230_s0 = scvt.s32.f32 %s229_s10  ;;  %p255_p2 = scmp.ge.s32.totalorder %s861_s19, 16 }
  0x85   :  { %p232_p3 = scmp.gt.s32.totalorder %s231_s11, 0  ;;  %p492_p4 = scmp.lt.s32.totalorder %s231_s11, 15 }
  0x86   :  { %v224_v3 = vadd.f32 %v223_v2, %v221_v1  ;;  %s1024_s8 = smov (!%p228_p11, %s497_s8), 0  ;;  %s246_s1 = ssub.f32 1.0, %s230_s0  ;;  %v249_v6 = vstv %s230_s0 }
  0x87   :  { %s1026_s11 = smov (!%p232_p3, %s231_s11), 0  ;;  %p238_p5 = scmp.gt.s32.totalorder %s1024_s8, 0 }
  0x88   :  { %225 = vst [vmem:[#allocation2 + $0x5] sm:$0x1] %v224_v3  ;;  %p498_p6 = scmp.lt.s32.totalorder %s1024_s8, 15  ;;  %s1028_s11 = smov (!%p492_p4, %s1026_s11), 15  ;;  %v247_v5 = vstv %s246_s1 }
  0x89   :  { %s1030_s8 = smov (!%p238_p5, %s1024_s8), 0  ;;  %s242_s6 = scalar_lea.vmem [#allocation5], %s1028_s11 }
  0x8a   :  { %s1032_s8 = smov (!%p498_p6, %s1030_s8), 15  ;;  %v243_v4 = vld [vmem:[%s242_s6] sm:$0x1]  ;;  %s509_s14 = sadd.s32 4294967280, %s861_s19 }
  0x8b   :  { %s256_s12 = scalar_select %p255_p2, 1, 0  ;;  %v248_v7 = vmul.f32 %v247_v5, %v243_v4 }
  0x8c   :  { %s244_s13 = scalar_lea.vmem [#allocation8], %s1032_s8  ;;  %s1034_s14 = smov (!%p255_p2, %s509_s14), 0 }
  0x8d   :  { %v245_v8 = vld [vmem:[%s244_s13] sm:$0x1]  ;;  %s257_s16 = scvt.s32.f32 %s256_s12  ;;  %p265_p9 = scmp.gt.s32.totalorder %s1034_s14, 0 }
  0x8e   :  { %v250_v9 = vmul.f32 %v249_v6, %v245_v8  ;;  %s258_s15 = scalar_select %p255_p2, 0, %s861_s19 }
  0x8f   :  { %p510_p10 = scmp.lt.s32.totalorder %s1034_s14, 15  ;;  %s1038_s14 = smov (!%p265_p9, %s1034_s14), 0  ;;  %v276_v11 = vstv %s257_s16 }
  0x90   :  { %v251_v10 = vadd.f32 %v250_v9, %v248_v7  ;;  %p259_p7 = scmp.gt.s32.totalorder %s258_s15, 0  ;;  %p504_p8 = scmp.lt.s32.totalorder %s258_s15, 15 }
  0x91   :  { %s1042_s14 = smov (!%p510_p10, %s1038_s14), 15  ;;  %s273_s20 = ssub.f32 1.0, %s257_s16 }
  0x92   :  { %252 = vst [vmem:[#allocation2 + $0x6] sm:$0x1] %v251_v10  ;;  %s1036_s15 = smov (!%p259_p7, %s258_s15), 0  ;;  %s271_s21 = scalar_lea.vmem [#allocation8], %s1042_s14 }
  0x93   :  { %s1040_s15 = smov (!%p504_p8, %s1036_s15), 15  ;;  %v272_v13 = vld [vmem:[%s271_s21] sm:$0x1]  ;;  %v274_v14 = vstv %s273_s20  ;;  %s753_s23 = smov [#allocation11]  }
  0x94   :  { %s269_s17 = scalar_lea.vmem [#allocation5], %s1040_s15  ;;  %v277_v16 = vmul.f32 %v276_v11, %v272_v13  ;;  %s394_s24 = sshll.u32 %s753_s23, 4  ;;  %s395_s24 = int_to_ptr.vmem [resolvable:$true] %s394_s24 }
  0x95   :  { %v270_v12 = vld [vmem:[%s269_s17] sm:$0x1]  ;;  %s714_s4 = scalar_lea.vmem %s395_s24, 128  ;;  %p719_p12 = scmp.lt.s32.totalorder %s395_s24, %s395_s24 }
  0x96   :  { %v275_v15 = vmul.f32 %v274_v14, %v270_v12  ;;  %p715_p11 = scmp.ne.s32.totalorder %s395_s24, %s714_s4  ;;  %p720_p13 = scmp.lt.s32.totalorder %s714_s4, %s714_s4 }
  0x98   :  { %v278_v17 = vadd.f32 %v277_v16, %v275_v15  ;;  %p721_p0 = por %p720_p13, %p719_p12 }
  0x9a   :  { %279 = vst [vmem:[#allocation2 + $0x7] sm:$0x1] %v278_v17  ;;  %p722_p1 = pnand %p721_p0, %p715_p11 }
  0xa1   :  { %v280_v18 = vld [vmem:[#allocation2] sm:$0xff] }
  0xa2   :  { %598 = vmatmul.mubr.f32.vlgmr.msra.gmra.mrb[0].mxu0 %v280_v18 }
 0x175   :  { %v370_v22 = vpop.f32.mrb[0].mxu0 }
 0x176   :  { %v371_v23 = vadd.f32 %v515_v21, %v370_v22  ;;  %v599_v24 = vpop.f32.mrb[1].mxu0 }
 0x178   :  { %v377_v25 = vsel %vm376_vm1, %v371_v23, -1e+30 }
 0x179   :  { %378 = vmax.xlane.f32.xlu0 %v377_v25 }
 0x206   :  { %v379_v26 = vpop.xlane.xlu0 %378 }
 0x207   :  { %v380_v27 = vsub.f32 %v377_v25, %v379_v26 }
 0x209   :  { %v381_v28 = vmul.f32 1.442695, %v380_v27 }
 0x20b   :  { %634 = vpow2.f32 %v381_v28 }
 0x215   :  { %v635_v29 = vpop.eup %634 }
 0x216   :  { %383 = vadd.xlane.f32.xlu0 %v635_v29 }
 0x2a3   :  { %v384_v30 = vpop.xlane.xlu0 %383 }
 0x2a4   :  { %636 = vrcp.f32 %v384_v30 }
 0x2ae   :  { %v637_v31 = vpop.eup %636 }
 0x2af   :  { %v386_v32 = vmul.f32 %v637_v31, %v635_v29 }
 0x2b1   :  { %387 = vst [vmem:[#allocation11] sm:$0xff] %v386_v32 }
 0x2b2   :  { %725 = shalt.err (!%p722_p1)
}
 0x2b3   :  { %s726_s26 = scalar_lea.hbm %s962_s5, 128 }
 0x2b4   :  { %p727_p2 = scmp.ne.s32.totalorder %s962_s5, %s726_s26  ;;  %p730_p3 = scmp.lt.u32.totalorder %s726_s26, %s962_s5 }
 0x2b6   :  { %p732_p4 = pnand %p730_p3, %p727_p2 }
 0x2b8   :  { %735 = shalt.err (!%p732_p4)
}
 0x2b9   :  { %397 = dma.vmem_to_hbm [thread:$0]  %s395_s24, 128, %s962_s5, [#allocation7]  }
 0x2ba   :  { %742 = dma.done.wait [#allocation7], 128  }
 0x2bb   :  { %743 = vsyncadd [#allocation7], 4294967168 }
 0x2bc   :  { %401 = vsyncpa [#allocation6], 1 }
 0x2bd   :  { %402 = vsyncpa [#allocation9], 1 }
 0x2be   :  { %403 = vsyncpa [#allocation7], 1 }

</bundles_post_ra>
